<compile_context>
chip_gen: v7x
topology: tpu7x:2x2x1
jax: 0.10.0
libtpu: 0.0.40
codegen_flags: <defaults>
</compile_context>

<pallas_src>
import math
import functools

import jax
import jax.numpy as jnp
from jax.experimental import pallas as pl
from jax.experimental.pallas import tpu as pltpu


VMEM_LIMIT = 32 * 1024 * 1024   # safe scoped-VMEM ceiling on v5e / v6e / v7x


# ----------------------------- tiling helpers ---------------------------------

def _row_tile(n_rows):
    for t in (256, 128, 64, 32, 16, 8):
        if n_rows % t == 0:
            return t
    return n_rows                       # full extent (always legal)


def _col_tile(n_cols):
    for t in (1024, 512, 256, 128):
        if n_cols % t == 0:
            return t
    return n_cols                       # full extent (always legal)


# ----------------------------- in-kernel math ----------------------------------

def _layernorm(x, g, b, eps=1e-5):
    mu = jnp.mean(x, axis=-1, keepdims=True)
    var = jnp.mean((x - mu) ** 2, axis=-1, keepdims=True)
    return (x - mu) * jax.lax.rsqrt(var + eps) * g + b


def _gelu_tanh(x):
    c = math.sqrt(2.0 / math.pi)
    return 0.5 * x * (1.0 + jnp.tanh(c * (x + 0.044715 * x * x * x)))


def _bdot(a, w):
    # bf16 MXU inputs, f32 accumulation.
    return jnp.dot(a.astype(jnp.bfloat16), w, preferred_element_type=jnp.float32)


# ----------------------------- kernels ------------------------------------------

def qkv_kernel(x_ref, g_ref, b_ref, w_ref, bias_ref, o_ref):
    xn = _layernorm(x_ref[...], g_ref[...], b_ref[...])
    o_ref[...] = _bdot(xn, w_ref[...]) + bias_ref[...]


def attn_kernel(q_ref, k_ref, v_ref, o_ref):
    # blocks are (1, L, hd): one head per grid step.
    L, hd = q_ref.shape[1], q_ref.shape[2]
    scale = 1.0 / math.sqrt(hd)

    q = q_ref[0].astype(jnp.bfloat16)          # (L, hd)
    k = k_ref[0].astype(jnp.bfloat16)
    v = v_ref[0].astype(jnp.bfloat16)

    # contract last dims directly (no explicit k.T / XLU transpose).
    s = jax.lax.dot_general(q, k, (((1,), (1,)), ((), ())),
                            preferred_element_type=jnp.float32) * scale

    causal = (jax.lax.broadcasted_iota(jnp.int32, (L, L), 0)
              >= jax.lax.broadcasted_iota(jnp.int32, (L, L), 1))
    s = jnp.where(causal, s, -jnp.inf)

    m = jnp.max(s, axis=-1, keepdims=True)
    e = jnp.exp(s - m)
    p = e * pl.reciprocal(jnp.sum(e, axis=-1, keepdims=True), approx=True)

    o_ref[0] = jnp.dot(p.astype(jnp.bfloat16), v,
                       preferred_element_type=jnp.float32)


def ffn_kernel(x_ref, a_ref, wo_ref, bo_ref, g2_ref, b2_ref,
               wfc_ref, bfc_ref, wpj_ref, bpj_ref, out_ref):
    # attention output projection + residual
    a = _bdot(a_ref[...], wo_ref[...]) + bo_ref[...]
    x = x_ref[...] + a
    # MLP + residual
    xn2 = _layernorm(x, g2_ref[...], b2_ref[...])
    h1 = _gelu_tanh(_bdot(xn2, wfc_ref[...]) + bfc_ref[...])
    m = _bdot(h1, wpj_ref[...]) + bpj_ref[...]
    out_ref[...] = x + m


def head_kernel(x_ref, g_ref, b_ref, w_ref, o_ref):
    xn = _layernorm(x_ref[...], g_ref[...], b_ref[...])
    o_ref[...] = _bdot(xn, w_ref[...])


# ----------------------------- pallas_call wrappers ------------------------------

def run_ln_qkv(x2d, g, b, w, bias):
    BL, D = x2d.shape
    N = w.shape[1]
    TM = _row_tile(BL)
    return pl.pallas_call(
        qkv_kernel,
        out_shape=jax.ShapeDtypeStruct((BL, N), jnp.float32),
        grid=(BL // TM,),
        in_specs=[
            pl.BlockSpec((TM, D), lambda i: (i, 0)),
            pl.BlockSpec((1, D), lambda i: (0, 0)),
            pl.BlockSpec((1, D), lambda i: (0, 0)),
            pl.BlockSpec((D, N), lambda i: (0, 0)),
            pl.BlockSpec((1, N), lambda i: (0, 0)),
        ],
        out_specs=pl.BlockSpec((TM, N), lambda i: (i, 0)),
        compiler_params=pltpu.CompilerParams(
            dimension_semantics=("parallel",),
            vmem_limit_bytes=VMEM_LIMIT),
        cost_estimate=pl.CostEstimate(
            flops=2 * BL * D * N,
            transcendentals=BL,
            bytes_accessed=4 * BL * (D + N) + 2 * D * N),
    )(x2d, g, b, w, bias)


def run_attention(q, k, v):
    BH, L, hd = q.shape
    blk = lambda: pl.BlockSpec((1, L, hd), lambda i: (i, 0, 0))
    return pl.pallas_call(
        attn_kernel,
        out_shape=jax.ShapeDtypeStruct((BH, L, hd), jnp.float32),
        grid=(BH,),
        in_specs=[blk(), blk(), blk()],
        out_specs=blk(),
        compiler_params=pltpu.CompilerParams(
            dimension_semantics=("parallel",),
            vmem_limit_bytes=VMEM_LIMIT),
        cost_estimate=pl.CostEstimate(
            flops=4 * BH * L * L * hd,
            transcendentals=BH * L * L,
            bytes_accessed=4 * 4 * BH * L * hd),
    )(q, k, v)


def run_ffn(x2d, attn2d, wo, bo, g2, b2, wfc, bfc, wpj, bpj):
    BL, D = x2d.shape
    D4 = wfc.shape[1]
    TM = _row_tile(BL)
    return pl.pallas_call(
        ffn_kernel,
        out_shape=jax.ShapeDtypeStruct((BL, D), jnp.float32),
        grid=(BL // TM,),
        in_specs=[
            pl.BlockSpec((TM, D), lambda i: (i, 0)),     # residual x
            pl.BlockSpec((TM, D), lambda i: (i, 0)),     # attention output
            pl.BlockSpec((D, D), lambda i: (0, 0)),      # wo
            pl.BlockSpec((1, D), lambda i: (0, 0)),      # bo
            pl.BlockSpec((1, D), lambda i: (0, 0)),      # ln2 gamma
            pl.BlockSpec((1, D), lambda i: (0, 0)),      # ln2 beta
            pl.BlockSpec((D, D4), lambda i: (0, 0)),     # wfc
            pl.BlockSpec((1, D4), lambda i: (0, 0)),     # bfc
            pl.BlockSpec((D4, D), lambda i: (0, 0)),     # wpj
            pl.BlockSpec((1, D), lambda i: (0, 0)),      # bpj
        ],
        out_specs=pl.BlockSpec((TM, D), lambda i: (i, 0)),
        compiler_params=pltpu.CompilerParams(
            dimension_semantics=("parallel",),
            vmem_limit_bytes=VMEM_LIMIT),
        cost_estimate=pl.CostEstimate(
            flops=2 * BL * D * D + 4 * BL * D * D4,
            transcendentals=BL * D4 + BL,
            bytes_accessed=4 * 3 * BL * D + 2 * (D * D + 2 * D * D4)),
    )(x2d, attn2d, wo, bo, g2, b2, wfc, bfc, wpj, bpj)


def run_head(x2d, g, b, w_lm):
    BL, D = x2d.shape
    V = w_lm.shape[1]
    TM = _row_tile(BL)
    TN = _col_tile(V)
    return pl.pallas_call(
        head_kernel,
        out_shape=jax.ShapeDtypeStruct((BL, V), jnp.float32),
        grid=(BL // TM, V // TN),
        in_specs=[
            pl.BlockSpec((TM, D), lambda i, j: (i, 0)),
            pl.BlockSpec((1, D), lambda i, j: (0, 0)),
            pl.BlockSpec((1, D), lambda i, j: (0, 0)),
            pl.BlockSpec((D, TN), lambda i, j: (0, j)),
        ],
        out_specs=pl.BlockSpec((TM, TN), lambda i, j: (i, j)),
        compiler_params=pltpu.CompilerParams(
            dimension_semantics=("parallel", "parallel"),
            vmem_limit_bytes=VMEM_LIMIT),
        cost_estimate=pl.CostEstimate(
            flops=2 * BL * D * V,
            transcendentals=BL,
            bytes_accessed=4 * BL * D + 2 * D * V + 4 * BL * V),
    )(x2d, g, b, w_lm)


# ----------------------------- parameter init -----------------------------------

def init_params(key, n_vocab, max_seq_len, n_layers, n_embed):
    f32, bf16 = jnp.float32, jnp.bfloat16

    def nrm(k, shape, dtype, scale=0.02):
        return (scale * jax.random.normal(k, shape, dtype=f32)).astype(dtype)

    keys = iter(jax.random.split(key, 8 + n_layers * 12))
    p = {
        "wte": nrm(next(keys), (n_vocab, n_embed), f32),
        "wpe": nrm(next(keys), (max_seq_len, n_embed), f32),
        "ln_f_g": jnp.ones((1, n_embed), f32),
        "ln_f_b": jnp.zeros((1, n_embed), f32),
        "lm_w": nrm(next(keys), (n_embed, n_vocab), bf16),
        "layers": [],
    }
    for _ in range(n_layers):
        layer = (
            jnp.ones((1, n_embed), f32),                    # ln1 gamma
            jnp.zeros((1, n_embed), f32),                   # ln1 beta
            nrm(next(keys), (n_embed, 3 * n_embed), bf16),  # c_attn W
            nrm(next(keys), (1, 3 * n_embed), f32),         # c_attn b
            nrm(next(keys), (n_embed, n_embed), bf16),      # attn c_proj W
            nrm(next(keys), (1, n_embed), f32),             # attn c_proj b
            jnp.ones((1, n_embed), f32),                    # ln2 gamma
            jnp.zeros((1, n_embed), f32),                   # ln2 beta
            nrm(next(keys), (n_embed, 4 * n_embed), bf16),  # c_fc W
            nrm(next(keys), (1, 4 * n_embed), f32),         # c_fc b
            nrm(next(keys), (4 * n_embed, n_embed), bf16),  # mlp c_proj W
            nrm(next(keys), (1, n_embed), f32),             # mlp c_proj b
        )
        p["layers"].append(layer)
    return p


# ----------------------------- model forward -------------------------------------

def gpt2_forward(tokens, params, n_heads):
    B, L = tokens.shape
    D = params["wte"].shape[1]
    H = n_heads
    hd = D // H

    # Embedding lookups are gathers -> plain JAX glue.
    h = params["wte"][tokens] + params["wpe"][jnp.arange(L)]     # (B, L, D) f32
    x2d = h.reshape(B * L, D).astype(jnp.float32)

    for (g1, b1, wqkv, bqkv, wo, bo, g2, b2, wfc, bfc, wpj, bpj) in params["layers"]:
        qkv2d = run_ln_qkv(x2d, g1, b1, wqkv, bqkv)              # (B*L, 3D) f32

        # split heads in XLA glue (layout plumbing only).
        q, k, v = jnp.split(qkv2d.reshape(B, L, 3 * D), 3, axis=-1)

        def to_heads(t):
            return (t.reshape(B, L, H, hd)
                      .transpose(0, 2, 1, 3)
                      .reshape(B * H, L, hd))

        o = run_attention(to_heads(q), to_heads(k), to_heads(v))  # (B*H, L, hd)
        attn2d = (o.reshape(B, H, L, hd)
                    .transpose(0, 2, 1, 3)
                    .reshape(B * L, D))

        x2d = run_ffn(x2d, attn2d, wo, bo, g2, b2, wfc, bfc, wpj, bpj)

    logits2d = run_head(x2d, params["ln_f_g"], params["ln_f_b"], params["lm_w"])
    return logits2d.reshape(B, L, -1)


# ----------------------------- pure-JAX reference ---------------------------------

def gpt2_reference(tokens, params, n_heads):
    B, L = tokens.shape
    D = params["wte"].shape[1]
    hd = D // n_heads
    bf16 = jnp.bfloat16
    scale = 1.0 / math.sqrt(hd)

    def bdot(a, w):
        return jnp.dot(a.astype(bf16), w.astype(bf16),
                       preferred_element_type=jnp.float32)

    def ln(t, g, b):
        mu = jnp.mean(t, -1, keepdims=True)
        var = jnp.mean((t - mu) ** 2, -1, keepdims=True)
        return (t - mu) * jax.lax.rsqrt(var + 1e-5) * g + b

    x = params["wte"][tokens] + params["wpe"][jnp.arange(L)]
    for (g1, b1, wqkv, bqkv, wo, bo, g2, b2, wfc, bfc, wpj, bpj) in params["layers"]:
        xn = ln(x, g1, b1)
        qkv = bdot(xn, wqkv) + bqkv
        q, k, v = jnp.split(qkv, 3, axis=-1)
        q = q.reshape(B, L, n_heads, hd).transpose(0, 2, 1, 3)
        k = k.reshape(B, L, n_heads, hd).transpose(0, 2, 1, 3)
        v = v.reshape(B, L, n_heads, hd).transpose(0, 2, 1, 3)
        s = jnp.einsum("bhqd,bhkd->bhqk", q.astype(bf16), k.astype(bf16),
                       preferred_element_type=jnp.float32) * scale
        mask = jnp.tril(jnp.ones((L, L), bool))
        s = jnp.where(mask, s, -jnp.inf)
        p = jax.nn.softmax(s, axis=-1)
        o = jnp.einsum("bhqk,bhkd->bhqd", p.astype(bf16), v.astype(bf16),
                       preferred_element_type=jnp.float32)
        o = o.transpose(0, 2, 1, 3).reshape(B, L, D)
        x = x + (bdot(o, wo) + bo)
        xn2 = ln(x, g2, b2)
        h1 = _gelu_tanh(bdot(xn2, wfc) + bfc)
        x = x + (bdot(h1, wpj) + bpj)
    xf = ln(x, params["ln_f_g"], params["ln_f_b"])
    return bdot(xf, params["lm_w"])


# ----------------------------- main -------------------------------------------------

if __name__ == "__main__":
    n_vocab, max_seq_len, n_layers, n_heads, n_embed = 64, 8, 2, 2, 32
    B, L = 2, 8

    key = jax.random.PRNGKey(0)
    k_tok, k_par = jax.random.split(key)
    tokens = jax.random.randint(k_tok, (B, L), 0, n_vocab, dtype=jnp.int32)
    params = init_params(k_par, n_vocab, max_seq_len, n_layers, n_embed)

    fwd = jax.jit(functools.partial(gpt2_forward, n_heads=n_heads))
    logits = jax.block_until_ready(fwd(tokens, params))

    ref = gpt2_reference(tokens, params, n_heads)
    assert logits.shape == (B, L, n_vocab)
    max_err = float(jnp.max(jnp.abs(logits - ref)))
    assert jnp.allclose(logits, ref, atol=2e-3, rtol=2e-3), max_err

    print("KERNEL_OK")
</pallas_src>

<mosaic_0001>
module attributes {stable_mosaic.version = 11 : i64} {
  func.func @qkv_kernel(%arg0: i32, %arg1: memref<16x32xf32, #tpu.memory_space<vmem>>, %arg2: memref<1x32xf32, #tpu.memory_space<vmem>>, %arg3: memref<1x32xf32, #tpu.memory_space<vmem>>, %arg4: memref<32x96xbf16, #tpu.memory_space<vmem>>, %arg5: memref<1x96xf32, #tpu.memory_space<vmem>>, %arg6: memref<16x96xf32, #tpu.memory_space<vmem>>) attributes {dimension_semantics = [#tpu.dimension_semantics<parallel>], iteration_bounds = array<i64: 1>, scalar_prefetch = 0 : i64, scratch_operands = 0 : i64, tpu.core_type = #tpu.core_type<tc>, window_params = [{transform_indices = @transform_0, window_bounds = array<i64: 16, 32>}, {pipeline_mode = #tpu.pipeline_mode<synchronous>, transform_indices = @transform_1, window_bounds = array<i64: 1, 32>}, {pipeline_mode = #tpu.pipeline_mode<synchronous>, transform_indices = @transform_2, window_bounds = array<i64: 1, 32>}, {pipeline_mode = #tpu.pipeline_mode<synchronous>, transform_indices = @transform_3, window_bounds = array<i64: 32, 96>}, {pipeline_mode = #tpu.pipeline_mode<synchronous>, transform_indices = @transform_4, window_bounds = array<i64: 1, 96>}, {transform_indices = @transform_5, window_bounds = array<i64: 16, 96>}]} {
    %c0 = arith.constant 0 : index
    %c0_0 = arith.constant 0 : index
    %0 = vector.load %arg1[%c0, %c0_0] : memref<16x32xf32, #tpu.memory_space<vmem>>, vector<16x32xf32>
    %c0_1 = arith.constant 0 : index
    %c0_2 = arith.constant 0 : index
    %1 = vector.load %arg2[%c0_1, %c0_2] : memref<1x32xf32, #tpu.memory_space<vmem>>, vector<1x32xf32>
    %c0_3 = arith.constant 0 : index
    %c0_4 = arith.constant 0 : index
    %2 = vector.load %arg3[%c0_3, %c0_4] : memref<1x32xf32, #tpu.memory_space<vmem>>, vector<1x32xf32>
    %cst = arith.constant dense<0.000000e+00> : vector<16xf32>
    %3 = vector.multi_reduction <add>, %0, %cst [1] : vector<16x32xf32> to vector<16xf32>
    %4 = vector.shape_cast %3 : vector<16xf32> to vector<16x1xf32>
    %cst_5 = arith.constant 3.200000e+01 : f32
    %5 = vector.broadcast %cst_5 : f32 to vector<16x1xf32>
    %6 = arith.divf %4, %5 : vector<16x1xf32>
    %7 = vector.broadcast %6 : vector<16x1xf32> to vector<16x32xf32>
    %8 = arith.subf %0, %7 : vector<16x32xf32>
    %9 = arith.mulf %8, %8 : vector<16x32xf32>
    %cst_6 = arith.constant dense<0.000000e+00> : vector<16xf32>
    %10 = vector.multi_reduction <add>, %9, %cst_6 [1] : vector<16x32xf32> to vector<16xf32>
    %11 = vector.shape_cast %10 : vector<16xf32> to vector<16x1xf32>
    %cst_7 = arith.constant 3.200000e+01 : f32
    %12 = vector.broadcast %cst_7 : f32 to vector<16x1xf32>
    %13 = arith.divf %11, %12 : vector<16x1xf32>
    %14 = vector.broadcast %6 : vector<16x1xf32> to vector<16x32xf32>
    %15 = arith.subf %0, %14 : vector<16x32xf32>
    %cst_8 = arith.constant 9.99999974E-6 : f32
    %16 = vector.broadcast %cst_8 : f32 to vector<16x1xf32>
    %17 = arith.addf %13, %16 : vector<16x1xf32>
    %18 = math.rsqrt %17 : vector<16x1xf32>
    %19 = vector.broadcast %18 : vector<16x1xf32> to vector<16x32xf32>
    %20 = arith.mulf %15, %19 : vector<16x32xf32>
    %21 = vector.broadcast %1 : vector<1x32xf32> to vector<16x32xf32>
    %22 = arith.mulf %20, %21 : vector<16x32xf32>
    %23 = vector.broadcast %2 : vector<1x32xf32> to vector<16x32xf32>
    %24 = arith.addf %22, %23 : vector<16x32xf32>
    %c0_9 = arith.constant 0 : index
    %c0_10 = arith.constant 0 : index
    %25 = vector.load %arg4[%c0_9, %c0_10] : memref<32x96xbf16, #tpu.memory_space<vmem>>, vector<32x96xbf16>
    %26 = arith.truncf %24 : vector<16x32xf32> to vector<16x32xbf16>
    %cst_11 = arith.constant dense<0.000000e+00> : vector<16x96xf32>
    %27 = tpu.matmul %26, %25, %cst_11 {dimension_numbers = #tpu.dot_dimension_numbers<[1], [0], [0], [1], [0, 0, 1, 1], [], []>} : vector<16x32xbf16>, vector<32x96xbf16>, vector<16x96xf32> -> vector<16x96xf32>
    %c0_12 = arith.constant 0 : index
    %c0_13 = arith.constant 0 : index
    %28 = vector.load %arg5[%c0_12, %c0_13] : memref<1x96xf32, #tpu.memory_space<vmem>>, vector<1x96xf32>
    %29 = vector.broadcast %28 : vector<1x96xf32> to vector<16x96xf32>
    %30 = arith.addf %27, %29 : vector<16x96xf32>
    %c0_14 = arith.constant 0 : index
    %c0_15 = arith.constant 0 : index
    %31 = vector.load %arg6[%c0_14, %c0_15] : memref<16x96xf32, #tpu.memory_space<vmem>>, vector<16x96xf32>
    tpu.vector_store %arg6[%c0_14, %c0_15], %30 {strides = array<i32>} : memref<16x96xf32, #tpu.memory_space<vmem>>, vector<16x96xf32>,
    return
  }
  func.func @transform_0(%arg0: i32) -> (i32, i32) {
    %c0_i32 = arith.constant 0 : i32
    %c0_i32_0 = arith.constant 0 : i32
    return %arg0, %c0_i32 : i32, i32
  }
  func.func @transform_1(%arg0: i32) -> (i32, i32) {
    %c0_i32 = arith.constant 0 : i32
    %c0_i32_0 = arith.constant 0 : i32
    %c0_i32_1 = arith.constant 0 : i32
    return %c0_i32, %c0_i32_0 : i32, i32
  }
  func.func @transform_2(%arg0: i32) -> (i32, i32) {
    %c0_i32 = arith.constant 0 : i32
    %c0_i32_0 = arith.constant 0 : i32
    %c0_i32_1 = arith.constant 0 : i32
    return %c0_i32, %c0_i32_0 : i32, i32
  }
  func.func @transform_3(%arg0: i32) -> (i32, i32) {
    %c0_i32 = arith.constant 0 : i32
    %c0_i32_0 = arith.constant 0 : i32
    %c0_i32_1 = arith.constant 0 : i32
    return %c0_i32, %c0_i32_0 : i32, i32
  }
  func.func @transform_4(%arg0: i32) -> (i32, i32) {
    %c0_i32 = arith.constant 0 : i32
    %c0_i32_0 = arith.constant 0 : i32
    %c0_i32_1 = arith.constant 0 : i32
    return %c0_i32, %c0_i32_0 : i32, i32
  }
  func.func @transform_5(%arg0: i32) -> (i32, i32) {
    %c0_i32 = arith.constant 0 : i32
    %c0_i32_0 = arith.constant 0 : i32
    return %arg0, %c0_i32 : i32, i32
  }
}

module attributes {stable_mosaic.version = 11 : i64} {
  func.func @attn_kernel(%arg0: i32, %arg1: memref<1x8x16xf32, #tpu.memory_space<vmem>>, %arg2: memref<1x8x16xf32, #tpu.memory_space<vmem>>, %arg3: memref<1x8x16xf32, #tpu.memory_space<vmem>>, %arg4: memref<1x8x16xf32, #tpu.memory_space<vmem>>) attributes {dimension_semantics = [#tpu.dimension_semantics<parallel>], iteration_bounds = array<i64: 4>, scalar_prefetch = 0 : i64, scratch_operands = 0 : i64, tpu.core_type = #tpu.core_type<tc>, window_params = [{transform_indices = @transform_0, window_bounds = array<i64: 1, 8, 16>}, {transform_indices = @transform_1, window_bounds = array<i64: 1, 8, 16>}, {transform_indices = @transform_2, window_bounds = array<i64: 1, 8, 16>}, {transform_indices = @transform_3, window_bounds = array<i64: 1, 8, 16>}]} {
    %c0 = arith.constant 0 : index
    %c0_0 = arith.constant 0 : index
    %c0_1 = arith.constant 0 : index
    %0 = vector.load %arg1[%c0, %c0_0, %c0_1] : memref<1x8x16xf32, #tpu.memory_space<vmem>>, vector<1x8x16xf32>
    %1 = vector.shape_cast %0 : vector<1x8x16xf32> to vector<8x16xf32>
    %2 = arith.truncf %1 : vector<8x16xf32> to vector<8x16xbf16>
    %c0_2 = arith.constant 0 : index
    %c0_3 = arith.constant 0 : index
    %c0_4 = arith.constant 0 : index
    %3 = vector.load %arg2[%c0_2, %c0_3, %c0_4] : memref<1x8x16xf32, #tpu.memory_space<vmem>>, vector<1x8x16xf32>
    %4 = vector.shape_cast %3 : vector<1x8x16xf32> to vector<8x16xf32>
    %5 = arith.truncf %4 : vector<8x16xf32> to vector<8x16xbf16>
    %c0_5 = arith.constant 0 : index
    %c0_6 = arith.constant 0 : index
    %c0_7 = arith.constant 0 : index
    %6 = vector.load %arg3[%c0_5, %c0_6, %c0_7] : memref<1x8x16xf32, #tpu.memory_space<vmem>>, vector<1x8x16xf32>
    %7 = vector.shape_cast %6 : vector<1x8x16xf32> to vector<8x16xf32>
    %8 = arith.truncf %7 : vector<8x16xf32> to vector<8x16xbf16>
    %cst = arith.constant dense<0.000000e+00> : vector<8x8xf32>
    %9 = tpu.matmul %2, %5, %cst {dimension_numbers = #tpu.dot_dimension_numbers<[1], [1], [0], [0], [0, 0, 1, 0], [], []>} : vector<8x16xbf16>, vector<8x16xbf16>, vector<8x8xf32> -> vector<8x8xf32>
    %cst_8 = arith.constant 2.500000e-01 : f32
    %10 = vector.broadcast %cst_8 : f32 to vector<8x8xf32>
    %11 = arith.mulf %9, %10 : vector<8x8xf32>
    %12 = tpu.iota {dimensions = array<i32: 0>} : vector<8x8xi32>
    %13 = tpu.iota {dimensions = array<i32: 1>} : vector<8x8xi32>
    %14 = arith.cmpi sge, %12, %13 : vector<8x8xi32>
    %cst_9 = arith.constant 0xFF800000 : f32
    %15 = vector.broadcast %cst_9 : f32 to vector<8x8xf32>
    %16 = arith.select %14, %11, %15 : vector<8x8xi1>, vector<8x8xf32>
    %cst_10 = arith.constant dense<0xFF800000> : vector<8xf32>
    %17 = vector.multi_reduction <maximumf>, %16, %cst_10 [1] : vector<8x8xf32> to vector<8xf32>
    %18 = vector.shape_cast %17 : vector<8xf32> to vector<8x1xf32>
    %19 = vector.broadcast %18 : vector<8x1xf32> to vector<8x8xf32>
    %20 = arith.subf %16, %19 : vector<8x8xf32>
    %21 = math.exp %20 : vector<8x8xf32>
    %cst_11 = arith.constant dense<0.000000e+00> : vector<8xf32>
    %22 = vector.multi_reduction <add>, %21, %cst_11 [1] : vector<8x8xf32> to vector<8xf32>
    %23 = vector.shape_cast %22 : vector<8xf32> to vector<8x1xf32>
    %24 = tpu.reciprocal %23 {approx = true} : vector<8x1xf32> -> vector<8x1xf32>
    %25 = vector.broadcast %24 : vector<8x1xf32> to vector<8x8xf32>
    %26 = arith.mulf %21, %25 : vector<8x8xf32>
    %27 = arith.truncf %26 : vector<8x8xf32> to vector<8x8xbf16>
    %cst_12 = arith.constant dense<0.000000e+00> : vector<8x16xf32>
    %28 = tpu.matmul %27, %8, %cst_12 {dimension_numbers = #tpu.dot_dimension_numbers<[1], [0], [0], [1], [0, 0, 1, 1], [], []>} : vector<8x8xbf16>, vector<8x16xbf16>, vector<8x16xf32> -> vector<8x16xf32>
    %c0_13 = arith.constant 0 : index
    %c0_14 = arith.constant 0 : index
    %c0_15 = arith.constant 0 : index
    %29 = vector.load %arg4[%c0_13, %c0_14, %c0_15] : memref<1x8x16xf32, #tpu.memory_space<vmem>>, vector<1x8x16xf32>
    %30 = vector.shape_cast %29 : vector<1x8x16xf32> to vector<8x16xf32>
    %31 = vector.shape_cast %28 : vector<8x16xf32> to vector<1x8x16xf32>
    tpu.vector_store %arg4[%c0_13, %c0_14, %c0_15], %31 {strides = array<i32>} : memref<1x8x16xf32, #tpu.memory_space<vmem>>, vector<1x8x16xf32>,
    return
  }
  func.func @transform_0(%arg0: i32) -> (i32, i32, i32) {
    %c0_i32 = arith.constant 0 : i32
    %c0_i32_0 = arith.constant 0 : i32
    %c0_i32_1 = arith.constant 0 : i32
    return %arg0, %c0_i32, %c0_i32_0 : i32, i32, i32
  }
  func.func @transform_1(%arg0: i32) -> (i32, i32, i32) {
    %c0_i32 = arith.constant 0 : i32
    %c0_i32_0 = arith.constant 0 : i32
    %c0_i32_1 = arith.constant 0 : i32
    return %arg0, %c0_i32, %c0_i32_0 : i32, i32, i32
  }
  func.func @transform_2(%arg0: i32) -> (i32, i32, i32) {
    %c0_i32 = arith.constant 0 : i32
    %c0_i32_0 = arith.constant 0 : i32
    %c0_i32_1 = arith.constant 0 : i32
    return %arg0, %c0_i32, %c0_i32_0 : i32, i32, i32
  }
  func.func @transform_3(%arg0: i32) -> (i32, i32, i32) {
    %c0_i32 = arith.constant 0 : i32
    %c0_i32_0 = arith.constant 0 : i32
    %c0_i32_1 = arith.constant 0 : i32
    return %arg0, %c0_i32, %c0_i32_0 : i32, i32, i32
  }
}

module attributes {stable_mosaic.version = 11 : i64} {
  func.func @ffn_kernel(%arg0: i32, %arg1: memref<16x32xf32, #tpu.memory_space<vmem>>, %arg2: memref<16x32xf32, #tpu.memory_space<vmem>>, %arg3: memref<32x32xbf16, #tpu.memory_space<vmem>>, %arg4: memref<1x32xf32, #tpu.memory_space<vmem>>, %arg5: memref<1x32xf32, #tpu.memory_space<vmem>>, %arg6: memref<1x32xf32, #tpu.memory_space<vmem>>, %arg7: memref<32x128xbf16, #tpu.memory_space<vmem>>, %arg8: memref<1x128xf32, #tpu.memory_space<vmem>>, %arg9: memref<128x32xbf16, #tpu.memory_space<vmem>>, %arg10: memref<1x32xf32, #tpu.memory_space<vmem>>, %arg11: memref<16x32xf32, #tpu.memory_space<vmem>>) attributes {dimension_semantics = [#tpu.dimension_semantics<parallel>], iteration_bounds = array<i64: 1>, scalar_prefetch = 0 : i64, scratch_operands = 0 : i64, tpu.core_type = #tpu.core_type<tc>, window_params = [{transform_indices = @transform_0, window_bounds = array<i64: 16, 32>}, {transform_indices = @transform_1, window_bounds = array<i64: 16, 32>}, {pipeline_mode = #tpu.pipeline_mode<synchronous>, transform_indices = @transform_2, window_bounds = array<i64: 32, 32>}, {pipeline_mode = #tpu.pipeline_mode<synchronous>, transform_indices = @transform_3, window_bounds = array<i64: 1, 32>}, {pipeline_mode = #tpu.pipeline_mode<synchronous>, transform_indices = @transform_4, window_bounds = array<i64: 1, 32>}, {pipeline_mode = #tpu.pipeline_mode<synchronous>, transform_indices = @transform_5, window_bounds = array<i64: 1, 32>}, {pipeline_mode = #tpu.pipeline_mode<synchronous>, transform_indices = @transform_6, window_bounds = array<i64: 32, 128>}, {pipeline_mode = #tpu.pipeline_mode<synchronous>, transform_indices = @transform_7, window_bounds = array<i64: 1, 128>}, {pipeline_mode = #tpu.pipeline_mode<synchronous>, transform_indices = @transform_8, window_bounds = array<i64: 128, 32>}, {pipeline_mode = #tpu.pipeline_mode<synchronous>, transform_indices = @transform_9, window_bounds = array<i64: 1, 32>}, {transform_indices = @transform_10, window_bounds = array<i64: 16, 32>}]} {
    %c0 = arith.constant 0 : index
    %c0_0 = arith.constant 0 : index
    %0 = vector.load %arg2[%c0, %c0_0] : memref<16x32xf32, #tpu.memory_space<vmem>>, vector<16x32xf32>
    %c0_1 = arith.constant 0 : index
    %c0_2 = arith.constant 0 : index
    %1 = vector.load %arg3[%c0_1, %c0_2] : memref<32x32xbf16, #tpu.memory_space<vmem>>, vector<32x32xbf16>
    %2 = arith.truncf %0 : vector<16x32xf32> to vector<16x32xbf16>
    %cst = arith.constant dense<0.000000e+00> : vector<16x32xf32>
    %3 = tpu.matmul %2, %1, %cst {dimension_numbers = #tpu.dot_dimension_numbers<[1], [0], [0], [1], [0, 0, 1, 1], [], []>} : vector<16x32xbf16>, vector<32x32xbf16>, vector<16x32xf32> -> vector<16x32xf32>
    %c0_3 = arith.constant 0 : index
    %c0_4 = arith.constant 0 : index
    %4 = vector.load %arg4[%c0_3, %c0_4] : memref<1x32xf32, #tpu.memory_space<vmem>>, vector<1x32xf32>
    %5 = vector.broadcast %4 : vector<1x32xf32> to vector<16x32xf32>
    %6 = arith.addf %3, %5 : vector<16x32xf32>
    %c0_5 = arith.constant 0 : index
    %c0_6 = arith.constant 0 : index
    %7 = vector.load %arg1[%c0_5, %c0_6] : memref<16x32xf32, #tpu.memory_space<vmem>>, vector<16x32xf32>
    %8 = arith.addf %7, %6 : vector<16x32xf32>
    %c0_7 = arith.constant 0 : index
    %c0_8 = arith.constant 0 : index
    %9 = vector.load %arg5[%c0_7, %c0_8] : memref<1x32xf32, #tpu.memory_space<vmem>>, vector<1x32xf32>
    %c0_9 = arith.constant 0 : index
    %c0_10 = arith.constant 0 : index
    %10 = vector.load %arg6[%c0_9, %c0_10] : memref<1x32xf32, #tpu.memory_space<vmem>>, vector<1x32xf32>
    %cst_11 = arith.constant dense<0.000000e+00> : vector<16xf32>
    %11 = vector.multi_reduction <add>, %8, %cst_11 [1] : vector<16x32xf32> to vector<16xf32>
    %12 = vector.shape_cast %11 : vector<16xf32> to vector<16x1xf32>
    %cst_12 = arith.constant 3.200000e+01 : f32
    %13 = vector.broadcast %cst_12 : f32 to vector<16x1xf32>
    %14 = arith.divf %12, %13 : vector<16x1xf32>
    %15 = vector.broadcast %14 : vector<16x1xf32> to vector<16x32xf32>
    %16 = arith.subf %8, %15 : vector<16x32xf32>
    %17 = arith.mulf %16, %16 : vector<16x32xf32>
    %cst_13 = arith.constant dense<0.000000e+00> : vector<16xf32>
    %18 = vector.multi_reduction <add>, %17, %cst_13 [1] : vector<16x32xf32> to vector<16xf32>
    %19 = vector.shape_cast %18 : vector<16xf32> to vector<16x1xf32>
    %cst_14 = arith.constant 3.200000e+01 : f32
    %20 = vector.broadcast %cst_14 : f32 to vector<16x1xf32>
    %21 = arith.divf %19, %20 : vector<16x1xf32>
    %22 = vector.broadcast %14 : vector<16x1xf32> to vector<16x32xf32>
    %23 = arith.subf %8, %22 : vector<16x32xf32>
    %cst_15 = arith.constant 9.99999974E-6 : f32
    %24 = vector.broadcast %cst_15 : f32 to vector<16x1xf32>
    %25 = arith.addf %21, %24 : vector<16x1xf32>
    %26 = math.rsqrt %25 : vector<16x1xf32>
    %27 = vector.broadcast %26 : vector<16x1xf32> to vector<16x32xf32>
    %28 = arith.mulf %23, %27 : vector<16x32xf32>
    %29 = vector.broadcast %9 : vector<1x32xf32> to vector<16x32xf32>
    %30 = arith.mulf %28, %29 : vector<16x32xf32>
    %31 = vector.broadcast %10 : vector<1x32xf32> to vector<16x32xf32>
    %32 = arith.addf %30, %31 : vector<16x32xf32>
    %c0_16 = arith.constant 0 : index
    %c0_17 = arith.constant 0 : index
    %33 = vector.load %arg7[%c0_16, %c0_17] : memref<32x128xbf16, #tpu.memory_space<vmem>>, vector<32x128xbf16>
    %34 = arith.truncf %32 : vector<16x32xf32> to vector<16x32xbf16>
    %cst_18 = arith.constant dense<0.000000e+00> : vector<16x128xf32>
    %35 = tpu.matmul %34, %33, %cst_18 {dimension_numbers = #tpu.dot_dimension_numbers<[1], [0], [0], [1], [0, 0, 1, 1], [], []>} : vector<16x32xbf16>, vector<32x128xbf16>, vector<16x128xf32> -> vector<16x128xf32>
    %c0_19 = arith.constant 0 : index
    %c0_20 = arith.constant 0 : index
    %36 = vector.load %arg8[%c0_19, %c0_20] : memref<1x128xf32, #tpu.memory_space<vmem>>, vector<1x128xf32>
    %37 = vector.broadcast %36 : vector<1x128xf32> to vector<16x128xf32>
    %38 = arith.addf %35, %37 : vector<16x128xf32>
    %cst_21 = arith.constant 5.000000e-01 : f32
    %39 = vector.broadcast %cst_21 : f32 to vector<16x128xf32>
    %40 = arith.mulf %39, %38 : vector<16x128xf32>
    %cst_22 = arith.constant 4.471500e-02 : f32
    %41 = vector.broadcast %cst_22 : f32 to vector<16x128xf32>
    %42 = arith.mulf %41, %38 : vector<16x128xf32>
    %43 = arith.mulf %42, %38 : vector<16x128xf32>
    %44 = arith.mulf %43, %38 : vector<16x128xf32>
    %45 = arith.addf %38, %44 : vector<16x128xf32>
    %cst_23 = arith.constant 0.797884583 : f32
    %46 = vector.broadcast %cst_23 : f32 to vector<16x128xf32>
    %47 = arith.mulf %46, %45 : vector<16x128xf32>
    %48 = math.tanh %47 : vector<16x128xf32>
    %cst_24 = arith.constant 1.000000e+00 : f32
    %49 = vector.broadcast %cst_24 : f32 to vector<16x128xf32>
    %50 = arith.addf %49, %48 : vector<16x128xf32>
    %51 = arith.mulf %40, %50 : vector<16x128xf32>
    %c0_25 = arith.constant 0 : index
    %c0_26 = arith.constant 0 : index
    %52 = vector.load %arg9[%c0_25, %c0_26] : memref<128x32xbf16, #tpu.memory_space<vmem>>, vector<128x32xbf16>
    %53 = arith.truncf %51 : vector<16x128xf32> to vector<16x128xbf16>
    %cst_27 = arith.constant dense<0.000000e+00> : vector<16x32xf32>
    %54 = tpu.matmul %53, %52, %cst_27 {dimension_numbers = #tpu.dot_dimension_numbers<[1], [0], [0], [1], [0, 0, 1, 1], [], []>} : vector<16x128xbf16>, vector<128x32xbf16>, vector<16x32xf32> -> vector<16x32xf32>
    %c0_28 = arith.constant 0 : index
    %c0_29 = arith.constant 0 : index
    %55 = vector.load %arg10[%c0_28, %c0_29] : memref<1x32xf32, #tpu.memory_space<vmem>>, vector<1x32xf32>
    %56 = vector.broadcast %55 : vector<1x32xf32> to vector<16x32xf32>
    %57 = arith.addf %54, %56 : vector<16x32xf32>
    %58 = arith.addf %8, %57 : vector<16x32xf32>
    %c0_30 = arith.constant 0 : index
    %c0_31 = arith.constant 0 : index
    %59 = vector.load %arg11[%c0_30, %c0_31] : memref<16x32xf32, #tpu.memory_space<vmem>>, vector<16x32xf32>
    tpu.vector_store %arg11[%c0_30, %c0_31], %58 {strides = array<i32>} : memref<16x32xf32, #tpu.memory_space<vmem>>, vector<16x32xf32>,
    return
  }
  func.func @transform_0(%arg0: i32) -> (i32, i32) {
    %c0_i32 = arith.constant 0 : i32
    %c0_i32_0 = arith.constant 0 : i32
    return %arg0, %c0_i32 : i32, i32
  }
  func.func @transform_1(%arg0: i32) -> (i32, i32) {
    %c0_i32 = arith.constant 0 : i32
    %c0_i32_0 = arith.constant 0 : i32
    return %arg0, %c0_i32 : i32, i32
  }
  func.func @transform_2(%arg0: i32) -> (i32, i32) {
    %c0_i32 = arith.constant 0 : i32
    %c0_i32_0 = arith.constant 0 : i32
    %c0_i32_1 = arith.constant 0 : i32
    return %c0_i32, %c0_i32_0 : i32, i32
  }
  func.func @transform_3(%arg0: i32) -> (i32, i32) {
    %c0_i32 = arith.constant 0 : i32
    %c0_i32_0 = arith.constant 0 : i32
    %c0_i32_1 = arith.constant 0 : i32
    return %c0_i32, %c0_i32_0 : i32, i32
  }
  func.func @transform_4(%arg0: i32) -> (i32, i32) {
    %c0_i32 = arith.constant 0 : i32
    %c0_i32_0 = arith.constant 0 : i32
    %c0_i32_1 = arith.constant 0 : i32
    return %c0_i32, %c0_i32_0 : i32, i32
  }
  func.func @transform_5(%arg0: i32) -> (i32, i32) {
    %c0_i32 = arith.constant 0 : i32
    %c0_i32_0 = arith.constant 0 : i32
    %c0_i32_1 = arith.constant 0 : i32
    return %c0_i32, %c0_i32_0 : i32, i32
  }
  func.func @transform_6(%arg0: i32) -> (i32, i32) {
    %c0_i32 = arith.constant 0 : i32
    %c0_i32_0 = arith.constant 0 : i32
    %c0_i32_1 = arith.constant 0 : i32
    return %c0_i32, %c0_i32_0 : i32, i32
  }
  func.func @transform_7(%arg0: i32) -> (i32, i32) {
    %c0_i32 = arith.constant 0 : i32
    %c0_i32_0 = arith.constant 0 : i32
    %c0_i32_1 = arith.constant 0 : i32
    return %c0_i32, %c0_i32_0 : i32, i32
  }
  func.func @transform_8(%arg0: i32) -> (i32, i32) {
    %c0_i32 = arith.constant 0 : i32
    %c0_i32_0 = arith.constant 0 : i32
    %c0_i32_1 = arith.constant 0 : i32
    return %c0_i32, %c0_i32_0 : i32, i32
  }
  func.func @transform_9(%arg0: i32) -> (i32, i32) {
    %c0_i32 = arith.constant 0 : i32
    %c0_i32_0 = arith.constant 0 : i32
    %c0_i32_1 = arith.constant 0 : i32
    return %c0_i32, %c0_i32_0 : i32, i32
  }
  func.func @transform_10(%arg0: i32) -> (i32, i32) {
    %c0_i32 = arith.constant 0 : i32
    %c0_i32_0 = arith.constant 0 : i32
    return %arg0, %c0_i32 : i32, i32
  }
}

module attributes {stable_mosaic.version = 11 : i64} {
  func.func @head_kernel(%arg0: i32, %arg1: i32, %arg2: memref<16x32xf32, #tpu.memory_space<vmem>>, %arg3: memref<1x32xf32, #tpu.memory_space<vmem>>, %arg4: memref<1x32xf32, #tpu.memory_space<vmem>>, %arg5: memref<32x64xbf16, #tpu.memory_space<vmem>>, %arg6: memref<16x64xf32, #tpu.memory_space<vmem>>) attributes {dimension_semantics = [#tpu.dimension_semantics<parallel>, #tpu.dimension_semantics<parallel>], iteration_bounds = array<i64: 1, 1>, scalar_prefetch = 0 : i64, scratch_operands = 0 : i64, tpu.core_type = #tpu.core_type<tc>, window_params = [{transform_indices = @transform_0, window_bounds = array<i64: 16, 32>}, {pipeline_mode = #tpu.pipeline_mode<synchronous>, transform_indices = @transform_1, window_bounds = array<i64: 1, 32>}, {pipeline_mode = #tpu.pipeline_mode<synchronous>, transform_indices = @transform_2, window_bounds = array<i64: 1, 32>}, {transform_indices = @transform_3, window_bounds = array<i64: 32, 64>}, {transform_indices = @transform_4, window_bounds = array<i64: 16, 64>}]} {
    %c0 = arith.constant 0 : index
    %c0_0 = arith.constant 0 : index
    %0 = vector.load %arg2[%c0, %c0_0] : memref<16x32xf32, #tpu.memory_space<vmem>>, vector<16x32xf32>
    %c0_1 = arith.constant 0 : index
    %c0_2 = arith.constant 0 : index
    %1 = vector.load %arg3[%c0_1, %c0_2] : memref<1x32xf32, #tpu.memory_space<vmem>>, vector<1x32xf32>
    %c0_3 = arith.constant 0 : index
    %c0_4 = arith.constant 0 : index
    %2 = vector.load %arg4[%c0_3, %c0_4] : memref<1x32xf32, #tpu.memory_space<vmem>>, vector<1x32xf32>
    %cst = arith.constant dense<0.000000e+00> : vector<16xf32>
    %3 = vector.multi_reduction <add>, %0, %cst [1] : vector<16x32xf32> to vector<16xf32>
    %4 = vector.shape_cast %3 : vector<16xf32> to vector<16x1xf32>
    %cst_5 = arith.constant 3.200000e+01 : f32
    %5 = vector.broadcast %cst_5 : f32 to vector<16x1xf32>
    %6 = arith.divf %4, %5 : vector<16x1xf32>
    %7 = vector.broadcast %6 : vector<16x1xf32> to vector<16x32xf32>
    %8 = arith.subf %0, %7 : vector<16x32xf32>
    %9 = arith.mulf %8, %8 : vector<16x32xf32>
    %cst_6 = arith.constant dense<0.000000e+00> : vector<16xf32>
    %10 = vector.multi_reduction <add>, %9, %cst_6 [1] : vector<16x32xf32> to vector<16xf32>
    %11 = vector.shape_cast %10 : vector<16xf32> to vector<16x1xf32>
    %cst_7 = arith.constant 3.200000e+01 : f32
    %12 = vector.broadcast %cst_7 : f32 to vector<16x1xf32>
    %13 = arith.divf %11, %12 : vector<16x1xf32>
    %14 = vector.broadcast %6 : vector<16x1xf32> to vector<16x32xf32>
    %15 = arith.subf %0, %14 : vector<16x32xf32>
    %cst_8 = arith.constant 9.99999974E-6 : f32
    %16 = vector.broadcast %cst_8 : f32 to vector<16x1xf32>
    %17 = arith.addf %13, %16 : vector<16x1xf32>
    %18 = math.rsqrt %17 : vector<16x1xf32>
    %19 = vector.broadcast %18 : vector<16x1xf32> to vector<16x32xf32>
    %20 = arith.mulf %15, %19 : vector<16x32xf32>
    %21 = vector.broadcast %1 : vector<1x32xf32> to vector<16x32xf32>
    %22 = arith.mulf %20, %21 : vector<16x32xf32>
    %23 = vector.broadcast %2 : vector<1x32xf32> to vector<16x32xf32>
    %24 = arith.addf %22, %23 : vector<16x32xf32>
    %c0_9 = arith.constant 0 : index
    %c0_10 = arith.constant 0 : index
    %25 = vector.load %arg5[%c0_9, %c0_10] : memref<32x64xbf16, #tpu.memory_space<vmem>>, vector<32x64xbf16>
    %26 = arith.truncf %24 : vector<16x32xf32> to vector<16x32xbf16>
    %cst_11 = arith.constant dense<0.000000e+00> : vector<16x64xf32>
    %27 = tpu.matmul %26, %25, %cst_11 {dimension_numbers = #tpu.dot_dimension_numbers<[1], [0], [0], [1], [0, 0, 1, 1], [], []>} : vector<16x32xbf16>, vector<32x64xbf16>, vector<16x64xf32> -> vector<16x64xf32>
    %c0_12 = arith.constant 0 : index
    %c0_13 = arith.constant 0 : index
    %28 = vector.load %arg6[%c0_12, %c0_13] : memref<16x64xf32, #tpu.memory_space<vmem>>, vector<16x64xf32>
    tpu.vector_store %arg6[%c0_12, %c0_13], %27 {strides = array<i32>} : memref<16x64xf32, #tpu.memory_space<vmem>>, vector<16x64xf32>,
    return
  }
  func.func @transform_0(%arg0: i32, %arg1: i32) -> (i32, i32) {
    %c0_i32 = arith.constant 0 : i32
    %c0_i32_0 = arith.constant 0 : i32
    return %arg0, %c0_i32 : i32, i32
  }
  func.func @transform_1(%arg0: i32, %arg1: i32) -> (i32, i32) {
    %c0_i32 = arith.constant 0 : i32
    %c0_i32_0 = arith.constant 0 : i32
    %c0_i32_1 = arith.constant 0 : i32
    return %c0_i32, %c0_i32_0 : i32, i32
  }
  func.func @transform_2(%arg0: i32, %arg1: i32) -> (i32, i32) {
    %c0_i32 = arith.constant 0 : i32
    %c0_i32_0 = arith.constant 0 : i32
    %c0_i32_1 = arith.constant 0 : i32
    return %c0_i32, %c0_i32_0 : i32, i32
  }
  func.func @transform_3(%arg0: i32, %arg1: i32) -> (i32, i32) {
    %c0_i32 = arith.constant 0 : i32
    %c0_i32_0 = arith.constant 0 : i32
    return %c0_i32, %arg1 : i32, i32
  }
  func.func @transform_4(%arg0: i32, %arg1: i32) -> (i32, i32) {
    %c0_i32 = arith.constant 0 : i32
    return %arg0, %arg1 : i32, i32
  }
}

</mosaic_0001>

<bundles_post_ra>
// kernel: gpt2_forward.7
= control target key start
LH: loop header
LB: loop body
LE: loop exit
PB: predicated region body
PF: predicated region fallthrough
CT: control target
= control target key end

     0   :  { %vm25_vm0 = vcmask 261120   ;;  %v169_v15 = vmov 0.0   ;;  %vm170_vm1 = vmmov 0   ;;  %vm137_vm2 = vcmask 785408   ;;  %s233_s0 = inlined_call_operand.vmem [shape: f32[16,32], index: 0, kind: input, shape index: {}]   ;;  %s234_s3 = inlined_call_operand.vmem [shape: bf16[32,96], index: 3, kind: input, shape index: {}]   ;;  %s235_s1 = inlined_call_operand.vmem [shape: f32[1,32], index: 1, kind: input, shape index: {}]   ;;  %s236_s2 = inlined_call_operand.vmem [shape: f32[1,32], index: 2, kind: input, shape index: {}]   ;;  %s237_s4 = inlined_call_operand.vmem [shape: f32[1,96], index: 4, kind: input, shape index: {}]   ;;  %s238_s5 = inlined_call_operand.vmem [shape: f32[16,96], index: 5, kind: output, shape index: {}]  }
   0x1   :  { %v21_v0 = vld [vmem:[%s233_s0] sm:$0xff]  ;;  %v22_v1 = vld [vmem:[%s233_s0 + $0x8] sm:$0xff]  ;;  %153 = vmatprep.subr.bf16.mxu0 %v169_v15  ;;  %157 = vmatprep.mubr.msk.bf16.mxu0 %vm170_vm1, %v169_v15 }
   0x2   :  { %v26_v2 = vsel %vm25_vm0, %v21_v0, 0.0  ;;  %v29_v3 = vsel %vm25_vm0, %v22_v1, 0.0  ;;  %v163_v14 = vld [vmem:[%s234_s3] sm:$0xff]   ;;  %v164_v16 = vld [vmem:[%s234_s3 + $0x8] sm:$0xff]  }
   0x3   :  { %27 = vadd.xlane.f32.xlu0 %v26_v2  ;;  %154 = vmatpush3.bf16.msra.mxu0 %v163_v14  ;;  %v144_v25 = vld [vmem:[%s235_s1] ss:$0 sm:$0xff] }
   0x4   :  { %155 = vmatprep.subr.bf16.mxu0 %v169_v15  ;;  %v145_v29 = vld [vmem:[%s236_s2] ss:$0 sm:$0xff] }
   0x5   :  { %v146_v34 = vld [vmem:[%s237_s4] ss:$0 sm:$0xff] }
   0x7   :  { %30 = vadd.xlane.f32.xlu0 %v29_v3  ;;  %156 = vmatpush3.bf16.msra.mxu0 %v164_v16 }
  0x90   :  { %v28_v4 = vpop.xlane.xlu0 %27 }
  0x91   :  { %v33_v5 = vmul.f32 0.03125, %v28_v4 }
  0x93   :  { %v35_v6 = vsub.f32 %v21_v0, %v33_v5 }
  0x94   :  { %v31_v7 = vpop.xlane.xlu0 %30 }
  0x95   :  { %v34_v8 = vmul.f32 0.03125, %v31_v7  ;;  %v37_v9 = vmul.f32 %v35_v6, %v35_v6 }
  0x97   :  { %v36_v10 = vsub.f32 %v22_v1, %v34_v8  ;;  %v39_v11 = vsel %vm25_vm0, %v37_v9, 0.0 }
  0x98   :  { %40 = vadd.xlane.f32.xlu1 %v39_v11 }
  0x99   :  { %v38_v12 = vmul.f32 %v36_v10, %v36_v10 }
  0x9b   :  { %v42_v13 = vsel %vm25_vm0, %v38_v12, 0.0 }
  0x9c   :  { %43 = vadd.xlane.f32.xlu1 %v42_v13 }
 0x125   :  { %v41_v17 = vpop.xlane.xlu1 %40 }
 0x126   :  { %v45_v18 = vmul.f32 0.03125, %v41_v17 }
 0x128   :  { %v47_v19 = vadd.f32 1e-05, %v45_v18 }
 0x129   :  { %v44_v20 = vpop.xlane.xlu1 %43 }
 0x12a   :  { %165 = vrsqrt.f32 %v47_v19  ;;  %v46_v21 = vmul.f32 0.03125, %v44_v20 }
 0x12c   :  { %v48_v22 = vadd.f32 1e-05, %v46_v21 }
 0x12e   :  { %167 = vrsqrt.f32 %v48_v22 }
 0x134   :  { %v166_v23 = vpop.eup %165 }
 0x135   :  { %v51_v24 = vmul.f32 %v166_v23, %v35_v6 }
 0x137   :  { %v59_v28 = vmul.f32 %v144_v25, %v51_v24 }
 0x138   :  { %v168_v26 = vpop.eup %167 }
 0x139   :  { %v52_v27 = vmul.f32 %v168_v26, %v36_v10  ;;  %v67_v31 = vadd.f32 %v145_v29, %v59_v28 }
 0x13b   :  { %v60_v30 = vmul.f32 %v144_v25, %v52_v27 }
 0x13d   :  { %v68_v32 = vadd.f32 %v145_v29, %v60_v30 }
 0x13f   :  { %v73_v33 = vpack.c.bf16 %v68_v32, %v67_v31 }
 0x141   :  { %158 = vmatmul.mubr.msk.bf16.vlgmr.msra.gmra.mrb[0].mxu0 %vm25_vm0, %v73_v33 }
 0x214   :  { %v130_v35 = vpop.f32.mrb[0].mxu0 }
 0x215   :  { %v131_v36 = vadd.f32 %v146_v34, %v130_v35  ;;  %v159_v37 = vpop.f32.mrb[1].mxu0 }
 0x216   :  { %v133_v38 = vpop.f32.mrb[2].mxu0 }
 0x217   :  { %138 = vst.msk [vmem:[%s238_s5] sm:$0xff] %vm137_vm2, %v131_v36  ;;  %v134_v39 = vadd.f32 %v146_v34, %v133_v38  ;;  %v160_v40 = vpop.f32.mrb[3].mxu0 }
 0x219   :  { %139 = vst.msk [vmem:[%s238_s5 + $0x8] sm:$0xff] %vm137_vm2, %v134_v39 }

// kernel: gpt2_forward.8
= control target key start
LH: loop header
LB: loop body
LE: loop exit
PB: predicated region body
PF: predicated region fallthrough
CT: control target
= control target key end

     0   :  { %s472_s12 = smov 0   ;;  %s507_s0 = inlined_call_operand.vmem [shape: f32[4,8,16], index: 0, kind: input, shape index: {}]   ;;  %s508_s1 = inlined_call_operand.vmem [shape: f32[4,8,16], index: 1, kind: input, shape index: {}]   ;;  %s509_s2 = inlined_call_operand.vmem [shape: f32[4,8,16], index: 2, kind: input, shape index: {}]   ;;  %s510_s3 = inlined_call_operand.vmem [shape: f32[4,8,16], index: 3, kind: output, shape index: {}]  }
   0x1 LB: > { %s399_s13 = sadd.s32 4294967295, %s448_s12   ;;  %p403_p0 = scmp.ge.s32.totalorder %s448_s12, 1  ;;  %s448_s12 = sphi %s472_s12, %s13_s12  }
   0x2   : > { %p154_p1 = scmp.lt.s32.totalorder %s448_s12, 5 }
   0x4   : > { %p155_p2 = pnand %p403_p0, %p154_p1 }
   0x5   : > { %p184_p3 = scmp.lt.s32.totalorder (!%p155_p2), %s399_s13, 3  ;;  %v450_v0 = vmov (!%p155_p2), 0.0   ;;  %vm451_vm0 = vmmov (!%p155_p2), 0   ;;  %vm207_vm1 = vcmask (!%p155_p2), 130048   ;;  %v255_v6 = vlaneseq (!%p155_p2) }
   0x6   : > { %158 = sbr.rel (%p155_p2) target bundleno = 773 (0x305), region = 32  ;;  %416 = vmatprep.subr.bf16.mxu0 (!%p155_p2), %v450_v0  ;;  %418 = vmatprep.mubr.msk.bf16.mxu0 (!%p155_p2), %vm451_vm0, %v450_v0  ;;  %vm261_vm3 = vcmask (!%p155_p2), 64512   ;;  %vm277_vm4 = vcmask (!%p155_p2), 1043456  }
   0x7   : > { %422 = vmatprep.subr.bf16.mxu1 (!%p155_p2), %v450_v0  ;;  %424 = vmatprep.mubr.msk.bf16.mxu1 (!%p155_p2), %vm451_vm0, %v450_v0  ;;  %v256_v7 = vshrl.u32 (!%p155_p2), %v255_v6, 7  ;;  %v258_v8 = vand.u32 (!%p155_p2), 127, %v255_v6 }
   0x9   : > { %vm259_vm2 = vcmp.ge.s32.totalorder (!%p155_p2), %v256_v7, %v258_v8 }
   0xd   : > { %s512_s13 = smov (!%p184_p3, %s399_s13), 3 }
   0xe   : > { %s480_s14 = sshll.u32 %s512_s13, 3 }
   0xf   : > { %s191_s17 = scalar_lea.vmem %s508_s1, %s480_s14  ;;  %s187_s20 = scalar_lea.vmem %s507_s0, %s480_s14 }
  0x10   : > { %v203_v1 = vld [vmem:[%s191_s17] sm:$0xff]  ;;  %s195_s23 = scalar_lea.vmem %s509_s2, %s480_s14  ;;  %s199_s26 = scalar_lea.vmem %s510_s3, %s480_s14 }
  0x11   : > { %v204_v2 = vpack.c.bf16 %v203_v1, %v203_v1  ;;  %v201_v4 = vld [vmem:[%s187_s20] sm:$0xff] }
  0x12   : > { %v202_v5 = vpack.c.bf16 %v201_v4, %v201_v4  ;;  %v205_v21 = vld [vmem:[%s195_s23] sm:$0xff] }
  0x13   : > { %v212_v3 = vsel %vm207_vm1, %v204_v2, 0  ;;  %v206_v22 = vpack.c.bf16 %v205_v21, %v205_v21 }
  0x14   : > { %417 = vmatpush3.bf16.xpose.msra.mxu0 %v212_v3 }
  0x15   : > { %v279_v23 = vsel %vm277_vm4, %v206_v22, 0 }
  0x16   : > { %423 = vmatpush3.bf16.msra.mxu1 %v279_v23 }
  0x1b   : > { %419 = vmatmul.mubr.msk.bf16.vlgmr.msra.gmra.mrb[0].mxu0 %vm207_vm1, %v202_v5 }
  0xee   : > { %v248_v9 = vpop.f32.mrb[0].mxu0 }
  0xef   : > { %v254_v10 = vmul.f32 0.25, %v248_v9  ;;  %v420_v11 = vpop.f32.mrb[1].mxu0 }
  0xf0   : > { %v251_v12 = vpop.f32.mrb[2].mxu0 }
  0xf1   : > { %v421_v13 = vpop.f32.mrb[3].mxu0  ;;  %v260_v14 = vsel %vm259_vm2, %v254_v10, -inf }
  0xf2   : > { %v262_v15 = vsel %vm261_vm3, %v260_v14, -inf }
  0xf3   : > { %263 = vmax.xlane.f32.xlu0 %v262_v15 }
 0x180   : > { %v264_v16 = vpop.xlane.xlu0 %263 }
 0x181   : > { %v265_v17 = vsub.f32 %v260_v14, %v264_v16 }
 0x183   : > { %v266_v18 = vmul.f32 1.442695, %v265_v17 }
 0x185   : > { %438 = vpow2.f32 %v266_v18 }
 0x18f   : > { %v439_v19 = vpop.eup %438 }
 0x190   : > { %v268_v20 = vsel %vm261_vm3, %v439_v19, 0.0 }
 0x191   : > { %269 = vadd.xlane.f32.xlu0 %v268_v20 }
 0x21e   : > { %v270_v24 = vpop.xlane.xlu0 %269 }
 0x21f   : > { %440 = vrcp.f32 %v270_v24 }
 0x229   : > { %v441_v25 = vpop.eup %440 }
 0x22a   : > { %v272_v26 = vmul.f32 %v441_v25, %v439_v19 }
 0x22c   : > { %v273_v27 = vpack.c.bf16 %v272_v26, %v272_v26 }
 0x22e   : > { %425 = vmatmul.mubr.msk.bf16.vlgmr.msra.gmra.mrb[0].mxu1 %vm261_vm3, %v273_v27 }
 0x301   : > { %v315_v28 = vpop.f32.mrb[0].mxu1 }
 0x302   : > { %321 = vst.msk [vmem:[%s199_s26] sm:$0xff] %vm207_vm1, %v315_v28  ;;  %v426_v29 = vpop.f32.mrb[1].mxu1 }
 0x303   : > { %v318_v30 = vpop.f32.mrb[2].mxu1 }
 0x304   : > { %v427_v31 = vpop.f32.mrb[3].mxu1 }
 0x305 PF: > { %s13_s12 = sadd.s32 1, %s448_s12  }
 0x306   : > { %p10_p4 = scmp.ge.s32.totalorder %s13_s12, 6  }
 0x308   :  { %12 = sbr.rel (!%p10_p4) target bundleno = 1 (0x1), region = 68 }

// kernel: gpt2_forward.13
= control target key start
LH: loop header
LB: loop body
LE: loop exit
PB: predicated region body
PF: predicated region fallthrough
CT: control target
= control target key end

     0   :  { %vm23_vm0 = vcmask 261120   ;;  %s263_s0 = inlined_call_operand.vmem [shape: f32[16,32], index: 0, kind: input, shape index: {}]   ;;  %s264_s1 = inlined_call_operand.vmem [shape: f32[1,32], index: 1, kind: input, shape index: {}]   ;;  %s265_s2 = inlined_call_operand.vmem [shape: f32[1,32], index: 2, kind: input, shape index: {}]   ;;  %s266_s3 = inlined_call_operand.vmem [shape: bf16[32,64], index: 3, kind: input, shape index: {}]   ;;  %s267_s4 = inlined_call_operand.hbm [shape: f32[16,64], index: 4, kind: output, shape index: {}]  }
   0x1   :  { %v19_v0 = vld [vmem:[%s263_s0] sm:$0xff]  ;;  %v20_v1 = vld [vmem:[%s263_s0 + $0x8] sm:$0xff] }
   0x2   :  { %v24_v2 = vsel %vm23_vm0, %v19_v0, 0.0 }
   0x3   :  { %25 = vadd.xlane.f32.xlu0 %v24_v2 }
   0x4   :  { %9 = vsyncpa [#allocation3], 0  ;;  %v27_v3 = vsel %vm23_vm0, %v20_v1, 0.0  ;;  %v168_v14 = vld [vmem:[%s266_s3] sm:$0xff]   ;;  %v198_v15 = vmov 0.0   ;;  %v169_v16 = vld [vmem:[%s266_s3 + $0x8] sm:$0xff]  }
   0x5   :  { %155 = vmatprep.subr.bf16.mxu0 %v198_v15  ;;  %vm199_vm1 = vmmov 0   ;;  %v147_v25 = vld [vmem:[%s264_s1] ss:$0 sm:$0xff]  ;;  %s200_s25 = smov [#allocation2]   ;;  %vm128_vm2 = vcmask 523264  }
   0x6   :  { %156 = vmatpush3.bf16.msra.mxu0 %v168_v14  ;;  %159 = vmatprep.mubr.msk.bf16.mxu0 %vm199_vm1, %v198_v15  ;;  %v148_v29 = vld [vmem:[%s265_s2] ss:$0 sm:$0xff]  ;;  %s136_s26 = sshll.u32 %s200_s25, 4  ;;  %s137_s26 = int_to_ptr.vmem [resolvable:$true] %s136_s26 }
   0x7   :  { %28 = vadd.xlane.f32.xlu0 %v27_v3  ;;  %157 = vmatprep.subr.bf16.mxu0 %v198_v15  ;;  %s174_s1 = scalar_lea.vmem %s137_s26, 256  ;;  %p179_p1 = scmp.lt.s32.totalorder %s137_s26, %s137_s26 }
   0x8   :  { %p175_p0 = scmp.ne.s32.totalorder %s137_s26, %s174_s1  ;;  %p180_p2 = scmp.lt.s32.totalorder %s174_s1, %s174_s1 }
   0xa   :  { %158 = vmatpush3.bf16.msra.mxu0 %v169_v16  ;;  %p181_p3 = por %p180_p2, %p179_p1 }
   0xc   :  { %p182_p4 = pnand %p181_p3, %p175_p0 }
  0x90   :  { %v26_v4 = vpop.xlane.xlu0 %25 }
  0x91   :  { %v31_v5 = vmul.f32 0.03125, %v26_v4 }
  0x93   :  { %v33_v6 = vsub.f32 %v19_v0, %v31_v5 }
  0x94   :  { %v29_v7 = vpop.xlane.xlu0 %28 }
  0x95   :  { %v32_v8 = vmul.f32 0.03125, %v29_v7  ;;  %v35_v9 = vmul.f32 %v33_v6, %v33_v6 }
  0x97   :  { %v34_v10 = vsub.f32 %v20_v1, %v32_v8  ;;  %v37_v11 = vsel %vm23_vm0, %v35_v9, 0.0 }
  0x98   :  { %38 = vadd.xlane.f32.xlu1 %v37_v11 }
  0x99   :  { %v36_v12 = vmul.f32 %v34_v10, %v34_v10 }
  0x9b   :  { %v40_v13 = vsel %vm23_vm0, %v36_v12, 0.0 }
  0x9c   :  { %41 = vadd.xlane.f32.xlu1 %v40_v13 }
 0x125   :  { %v39_v17 = vpop.xlane.xlu1 %38 }
 0x126   :  { %v43_v18 = vmul.f32 0.03125, %v39_v17 }
 0x128   :  { %v45_v19 = vadd.f32 1e-05, %v43_v18 }
 0x129   :  { %v42_v20 = vpop.xlane.xlu1 %41 }
 0x12a   :  { %170 = vrsqrt.f32 %v45_v19  ;;  %v44_v21 = vmul.f32 0.03125, %v42_v20 }
 0x12c   :  { %v46_v22 = vadd.f32 1e-05, %v44_v21 }
 0x12e   :  { %172 = vrsqrt.f32 %v46_v22 }
 0x134   :  { %v171_v23 = vpop.eup %170 }
 0x135   :  { %v49_v24 = vmul.f32 %v171_v23, %v33_v6 }
 0x137   :  { %v57_v28 = vmul.f32 %v147_v25, %v49_v24 }
 0x138   :  { %v173_v26 = vpop.eup %172 }
 0x139   :  { %v50_v27 = vmul.f32 %v173_v26, %v34_v10  ;;  %v65_v31 = vadd.f32 %v148_v29, %v57_v28 }
 0x13b   :  { %v58_v30 = vmul.f32 %v147_v25, %v50_v27 }
 0x13d   :  { %v66_v32 = vadd.f32 %v148_v29, %v58_v30 }
 0x13f   :  { %v71_v33 = vpack.c.bf16 %v66_v32, %v65_v31 }
 0x141   :  { %160 = vmatmul.mubr.msk.bf16.vlgmr.msra.gmra.mrb[0].mxu0 %vm23_vm0, %v71_v33 }
 0x214   :  { %v121_v34 = vpop.f32.mrb[0].mxu0 }
 0x215   :  { %129 = vst.msk [vmem:[#allocation2] sm:$0xff] %vm128_vm2, %v121_v34  ;;  %v161_v35 = vpop.f32.mrb[1].mxu0 }
 0x216   :  { %v124_v36 = vpop.f32.mrb[2].mxu0 }
 0x217   :  { %130 = vst.msk [vmem:[#allocation2 + $0x8] sm:$0xff] %vm128_vm2, %v124_v36  ;;  %v162_v37 = vpop.f32.mrb[3].mxu0 }
 0x218   :  { %185 = shalt.err (!%p182_p4)
}
 0x219   :  { %s186_s28 = scalar_lea.hbm %s267_s4, 256 }
 0x21a   :  { %p187_p5 = scmp.ne.s32.totalorder %s267_s4, %s186_s28  ;;  %p190_p6 = scmp.lt.u32.totalorder %s186_s28, %s267_s4 }
 0x21c   :  { %p192_p7 = pnand %p190_p6, %p187_p5 }
 0x21e   :  { %195 = shalt.err (!%p192_p7)
}
 0x21f   :  { %s201_s7 = smov 128   ;;  %s202_s8 = smov 8  }
 0x220   :  { %142 = dma.vmem_to_hbm [thread:$0]  %s137_s26, 256, %s267_s4, [#allocation3], %s201_s7, %s201_s7, %s202_s8  }
 0x221   :  { %196 = dma.done.wait [#allocation3], 256  }
 0x222   :  { %197 = vsyncadd [#allocation3], 4294967040 }
 0x223   :  { %146 = vsyncpa [#allocation3], 1 }

// kernel: gpt2_forward.9
= control target key start
LH: loop header
LB: loop body
LE: loop exit
PB: predicated region body
PF: predicated region fallthrough
CT: control target
= control target key end

     0   :  { %v455_v0 = vmov 0.0   ;;  %vm456_vm0 = vmmov 0   ;;  %vm62_vm1 = vcmask 261120   ;;  %s614_s2 = inlined_call_operand.vmem [shape: bf16[32,32], index: 2, kind: input, shape index: {}]   ;;  %s615_s1 = inlined_call_operand.vmem [shape: f32[16,32], index: 1, kind: input, shape index: {}]   ;;  %s616_s3 = inlined_call_operand.vmem [shape: f32[1,32], index: 3, kind: input, shape index: {}]   ;;  %s617_s0 = inlined_call_operand.vmem [shape: f32[16,32], index: 0, kind: input, shape index: {}]   ;;  %s618_s6 = inlined_call_operand.vmem [shape: bf16[32,128], index: 6, kind: input, shape index: {}]   ;;  %s619_s4 = inlined_call_operand.vmem [shape: f32[1,32], index: 4, kind: input, shape index: {}]   ;;  %s620_s5 = inlined_call_operand.vmem [shape: f32[1,32], index: 5, kind: input, shape index: {}]   ;;  %s621_s8 = inlined_call_operand.vmem [shape: bf16[128,32], index: 8, kind: input, shape index: {}]   ;;  %s622_s7 = inlined_call_operand.vmem [shape: f32[1,128], index: 7, kind: input, shape index: {}]   ;;  %s623_s9 = inlined_call_operand.vmem [shape: f32[1,32], index: 9, kind: input, shape index: {}]   ;;  %s624_s10 = inlined_call_operand.vmem [shape: f32[16,32], index: 10, kind: output, shape index: {}]  }
   0x1   :  { %397 = vmatprep.subr.bf16.mxu1 %v455_v0  ;;  %v435_v1 = vld [vmem:[%s614_s2] sm:$0xff]   ;;  %401 = vmatprep.mubr.msk.bf16.mxu1 %vm456_vm0, %v455_v0  ;;  %v436_v2 = vld [vmem:[%s614_s2 + $0x8] sm:$0xff]   ;;  %v441_v50 = vld [vmem:[%s621_s8 + $0x10] sm:$0xff]  }
   0x2   :  { %413 = vmatprep.subr.bf16.mxu0 %v455_v0  ;;  %429 = vmatprep.mubr.msk.bf16.mxu0 %vm456_vm0, %v455_v0  ;;  %v36_v3 = vld [vmem:[%s615_s1] sm:$0xff]  ;;  %v37_v4 = vld [vmem:[%s615_s1 + $0x8] sm:$0xff]  ;;  %v442_v51 = vld [vmem:[%s621_s8 + $0x18] sm:$0xff]  }
   0x3   :  { %398 = vmatpush3.bf16.msra.mxu1 %v435_v1  ;;  %v42_v5 = vpack.c.bf16 %v37_v4, %v36_v3  ;;  %v363_v6 = vld [vmem:[%s616_s3] ss:$0 sm:$0xff]  ;;  %v108_v12 = vld [vmem:[%s617_s0 + $0x8] sm:$0xff]  ;;  %v445_v54 = vld [vmem:[%s621_s8 + $0x30] sm:$0xff]  }
   0x4   :  { %399 = vmatprep.subr.bf16.mxu1 %v455_v0  ;;  %v107_v8 = vld [vmem:[%s617_s0] sm:$0xff]  ;;  %v438_v30 = vld [vmem:[%s618_s6 + $0x8] sm:$0xff]   ;;  %v446_v55 = vld [vmem:[%s621_s8 + $0x38] sm:$0xff]  }
   0x5   :  { %v437_v29 = vld [vmem:[%s618_s6] sm:$0xff]   ;;  %v440_v49 = vld [vmem:[%s621_s8 + $0x8] sm:$0xff]  }
   0x6   :  { %v367_v39 = vld [vmem:[%s619_s4] ss:$0 sm:$0xff]  ;;  %v444_v53 = vld [vmem:[%s621_s8 + $0x28] sm:$0xff]  }
   0x7   :  { %400 = vmatpush3.bf16.msra.mxu1 %v436_v2  ;;  %v368_v43 = vld [vmem:[%s620_s5] ss:$0 sm:$0xff] }
   0x8   :  { %405 = vmatprep.subr.bf16.mxu1 %v455_v0  ;;  %v439_v48 = vld [vmem:[%s621_s8] sm:$0xff]  }
   0x9   :  { %414 = vmatpush3.bf16.msra.mxu0 %v439_v48  ;;  %v443_v52 = vld [vmem:[%s621_s8 + $0x20] sm:$0xff]  }
   0xa   :  { %402 = vmatmul.mubr.msk.bf16.vlgmr.msra.gmra.mrb[0].mxu1 %vm62_vm1, %v42_v5  ;;  %415 = vmatprep.subr.bf16.mxu0 %v455_v0  ;;  %v369_v56 = vld [vmem:[%s622_s7] ss:$0 sm:$0xff] }
   0xb   :  { %409 = vmatprep.mubr.msk.bf16.mxu1 %vm456_vm0, %v455_v0  ;;  %406 = vmatpush3.bf16.msra.mxu1 %v437_v29 }
   0xc   :  { %407 = vmatprep.subr.bf16.mxu1 %v455_v0 }
   0xd   :  { %416 = vmatpush3.bf16.msra.mxu0 %v440_v49 }
   0xe   :  { %417 = vmatprep.subr.bf16.mxu0 %v455_v0 }
   0xf   :  { %408 = vmatpush3.bf16.msra.mxu1 %v438_v30 }
  0x11   :  { %418 = vmatpush3.bf16.msra.mxu0 %v441_v50 }
  0x12   :  { %419 = vmatprep.subr.bf16.mxu0 %v455_v0 }
  0x15   :  { %420 = vmatpush3.bf16.msra.mxu0 %v442_v51 }
  0x16   :  { %421 = vmatprep.subr.bf16.mxu0 %v455_v0 }
  0x19   :  { %422 = vmatpush3.bf16.msra.mxu0 %v443_v52 }
  0x1a   :  { %423 = vmatprep.subr.bf16.mxu0 %v455_v0 }
  0x1d   :  { %424 = vmatpush3.bf16.msra.mxu0 %v444_v53 }
  0x1e   :  { %425 = vmatprep.subr.bf16.mxu0 %v455_v0 }
  0x21   :  { %426 = vmatpush3.bf16.msra.mxu0 %v445_v54 }
  0x22   :  { %427 = vmatprep.subr.bf16.mxu0 %v455_v0 }
  0x25   :  { %428 = vmatpush3.bf16.msra.mxu0 %v446_v55 }
  0xdd   :  { %v100_v7 = vpop.f32.mrb[0].mxu1 }
  0xde   :  { %v101_v9 = vadd.f32 %v363_v6, %v100_v7  ;;  %v403_v10 = vpop.f32.mrb[1].mxu1 }
  0xdf   :  { %v103_v11 = vpop.f32.mrb[2].mxu1 }
  0xe0   :  { %v541_v13 = vadd.f32 %v107_v8, %v101_v9  ;;  %v104_v14 = vadd.f32 %v363_v6, %v103_v11  ;;  %v404_v15 = vpop.f32.mrb[3].mxu1 }
  0xe2   :  { %v543_v16 = vadd.f32 %v108_v12, %v104_v14  ;;  %v113_v17 = vsel %vm62_vm1, %v541_v13, 0.0 }
  0xe3   :  { %114 = vadd.xlane.f32.xlu0 %v113_v17 }
  0xe4   :  { %v116_v18 = vsel %vm62_vm1, %v543_v16, 0.0 }
  0xe7   :  { %117 = vadd.xlane.f32.xlu0 %v116_v18 }
 0x170   :  { %v115_v19 = vpop.xlane.xlu0 %114 }
 0x171   :  { %v120_v20 = vmul.f32 0.03125, %v115_v19 }
 0x173   :  { %v122_v21 = vsub.f32 %v541_v13, %v120_v20  ;;  %v373_v20 = vld [vmem:[%s623_s9] ss:$0 sm:$0xff] }
 0x174   :  { %v118_v22 = vpop.xlane.xlu0 %117 }
 0x175   :  { %v121_v23 = vmul.f32 0.03125, %v118_v22  ;;  %v124_v24 = vmul.f32 %v122_v21, %v122_v21 }
 0x177   :  { %v123_v25 = vsub.f32 %v543_v16, %v121_v23  ;;  %v126_v26 = vsel %vm62_vm1, %v124_v24, 0.0 }
 0x178   :  { %127 = vadd.xlane.f32.xlu1 %v126_v26 }
 0x179   :  { %v125_v27 = vmul.f32 %v123_v25, %v123_v25 }
 0x17b   :  { %v129_v28 = vsel %vm62_vm1, %v125_v27, 0.0 }
 0x17c   :  { %130 = vadd.xlane.f32.xlu1 %v129_v28 }
 0x205   :  { %v128_v31 = vpop.xlane.xlu1 %127 }
 0x206   :  { %v132_v32 = vmul.f32 0.03125, %v128_v31 }
 0x208   :  { %v134_v33 = vadd.f32 1e-05, %v132_v32 }
 0x209   :  { %v131_v34 = vpop.xlane.xlu1 %130 }
 0x20a   :  { %447 = vrsqrt.f32 %v134_v33  ;;  %v133_v35 = vmul.f32 0.03125, %v131_v34 }
 0x20c   :  { %v135_v36 = vadd.f32 1e-05, %v133_v35 }
 0x20e   :  { %449 = vrsqrt.f32 %v135_v36 }
 0x214   :  { %v448_v37 = vpop.eup %447 }
 0x215   :  { %v138_v38 = vmul.f32 %v448_v37, %v122_v21 }
 0x217   :  { %v146_v41 = vmul.f32 %v367_v39, %v138_v38 }
 0x218   :  { %v450_v40 = vpop.eup %449 }
 0x219   :  { %v139_v42 = vmul.f32 %v450_v40, %v123_v25  ;;  %v154_v45 = vadd.f32 %v368_v43, %v146_v41 }
 0x21b   :  { %v147_v44 = vmul.f32 %v367_v39, %v139_v42 }
 0x21d   :  { %v155_v46 = vadd.f32 %v368_v43, %v147_v44 }
 0x21f   :  { %v160_v47 = vpack.c.bf16 %v155_v46, %v154_v45 }
 0x221   :  { %410 = vmatmul.mubr.msk.bf16.vlgmr.msra.gmra.mrb[4].mxu1 %vm62_vm1, %v160_v47 }
 0x2f4   :  { %v217_v57 = vpop.f32.mrb[4].mxu1 }
 0x2f5   :  { %v218_v58 = vadd.f32 %v369_v56, %v217_v57  ;;  %v411_v59 = vpop.f32.mrb[5].mxu1 }
 0x2f6   :  { %v220_v60 = vpop.f32.mrb[6].mxu1 }
 0x2f7   :  { %v226_v61 = vmul.f32 0.044715, %v218_v58  ;;  %v221_v62 = vadd.f32 %v369_v56, %v220_v60  ;;  %v412_v63 = vpop.f32.mrb[7].mxu1  ;;  %v224_v12 = vmul.f32 0.5, %v218_v58 }
 0x2f9   :  { %v228_v1 = vmul.f32 %v226_v61, %v218_v58  ;;  %v227_v2 = vmul.f32 0.044715, %v221_v62  ;;  %v225_v14 = vmul.f32 0.5, %v221_v62 }
 0x2fb   :  { %v230_v3 = vmul.f32 %v228_v1, %v218_v58  ;;  %v229_v4 = vmul.f32 %v227_v2, %v221_v62 }
 0x2fd   :  { %v231_v5 = vmul.f32 %v229_v4, %v221_v62  ;;  %v232_v6 = vadd.f32 %v230_v3, %v218_v58 }
 0x2ff   :  { %v233_v7 = vadd.f32 %v231_v5, %v221_v62  ;;  %v234_v0 = vmul.f32 0.7978846, %v232_v6 }
 0x301   :  { %v235_v8 = vmul.f32 0.7978846, %v233_v7  ;;  %451 = vtanh.f32 %v234_v0 }
 0x303   :  { %453 = vtanh.f32 %v235_v8 }
 0x30b   :  { %v452_v9 = vpop.eup %451 }
 0x30c   :  { %v238_v10 = vadd.f32 1.0, %v452_v9 }
 0x30d   :  { %v454_v11 = vpop.eup %453 }
 0x30e   :  { %v239_v15 = vadd.f32 1.0, %v454_v11  ;;  %v240_v17 = vmul.f32 %v238_v10, %v224_v12 }
 0x310   :  { %v241_v18 = vmul.f32 %v239_v15, %v225_v14 }
 0x312   :  { %v258_v19 = vpack.c.bf16 %v241_v18, %v240_v17 }
 0x314   :  { %430 = vmatmul.mubr.bf16.vlgmr.msra.gmra.mrb[0].mxu0 %v258_v19 }
 0x3e7   :  { %v348_v21 = vpop.f32.mrb[0].mxu0 }
 0x3e8   :  { %v349_v22 = vadd.f32 %v373_v20, %v348_v21  ;;  %v431_v23 = vpop.f32.mrb[1].mxu0 }
 0x3e9   :  { %v351_v24 = vpop.f32.mrb[2].mxu0 }
 0x3ea   :  { %v355_v25 = vadd.f32 %v349_v22, %v541_v13  ;;  %v352_v26 = vadd.f32 %v373_v20, %v351_v24  ;;  %v432_v27 = vpop.f32.mrb[3].mxu0 }
 0x3ec   :  { %357 = vst.msk [vmem:[%s624_s10] sm:$0xff] %vm62_vm1, %v355_v25  ;;  %v356_v28 = vadd.f32 %v352_v26, %v543_v16 }
 0x3ee   :  { %358 = vst.msk [vmem:[%s624_s10 + $0x8] sm:$0xff] %vm62_vm1, %v356_v28 }

</bundles_post_ra>
